<compile_context>
chip_gen: v5e
topology: v5e:2x2
jax: 0.10.0
libtpu: 0.0.40
codegen_flags: <defaults>
</compile_context>

<pallas_src>
import jax
import jax.numpy as jnp
from jax.experimental import pallas as pl
from jax.experimental.pallas import tpu as pltpu

INPUT_DIM = 11
HIDDEN1 = 150
HIDDEN2 = 300
OUTPUT_DIM = 1

LANE = 128
TILE_B_CAP = 2048  # working set at 2048 is ~6-8 MiB: fits every generation's scoped VMEM


def _round_up(n, m):
    return ((n + m - 1) // m) * m


def _choose_tile_b(b_pad, cap=TILE_B_CAP):
    """Pick tile_b as a (lane-aligned) divisor of b_pad, <= cap, with >= 2 grid
    steps whenever b_pad allows it (keeps both v7x TensorCores busy)."""
    m = b_pad // LANE
    d_cap = max(1, cap // LANE)
    if m >= 2:
        d_cap = min(d_cap, m // 2)   # ensure at least 2 batch tiles
    d_cap = max(d_cap, 1)
    d = 1
    for cand in range(1, d_cap + 1):
        if m % cand == 0:
            d = cand
    return d * LANE


def mlp_kernel(xt_ref, w1_ref, b1_ref, w2_ref, b2_ref, w3_ref, b3_ref, ot_ref):
    # xt: (INPUT_DIM, TILE_B) bf16
    # w1: (H1, INPUT_DIM) bf16, w2: (H2, H1) bf16, w3: (H2, 1) f32 column
    # b1: (H1, 1) f32, b2: (H2, 1) f32, b3: (1, 1) f32
    xt = xt_ref[...]
    # Layer 1 (MXU) + fused bias/ReLU, single bf16 downcast for layer 2's operand.
    h1 = jnp.maximum(
        jnp.dot(w1_ref[...], xt, preferred_element_type=jnp.float32) + b1_ref[...],
        0.0)                                                       # (H1, TILE_B) f32
    # Layer 2 (MXU) + fused bias/ReLU.
    h2 = jnp.maximum(
        jnp.dot(w2_ref[...], h1.astype(jnp.bfloat16),
                preferred_element_type=jnp.float32) + b2_ref[...],
        0.0)                                                       # (H2, TILE_B) f32
    # Layer 3: 1x300 projection on VPU/XLU (broadcast-mul + sublane reduce) instead
    # of a padded M=1 MXU pass.
    out = jnp.sum(w3_ref[...] * h2, axis=0, keepdims=True) + b3_ref[...]  # (1, TILE_B)
    ot_ref[...] = out.astype(ot_ref.dtype)


def mlp_forward(x, params):
    w1, b1, w2, b2, w3, b3 = params
    B = x.shape[0]

    b_pad = _round_up(B, LANE)          # pad batch only to a lane multiple
    tile_b = _choose_tile_b(b_pad)      # exact divisor of b_pad -> no phantom tiles
    grid = (b_pad // tile_b,)

    # One fused pad + transpose + bf16 cast: (B, 11) f32 -> (11, b_pad) bf16.
    x_t = jnp.pad(x, ((0, b_pad - B), (0, 0))).T.astype(jnp.bfloat16)

    def resident(shape):
        # Constant block index -> stays VMEM-resident across the batch grid.
        # (pl.Buffered(1) would reclaim a few hundred KiB on v7x; left at default.)
        return pl.BlockSpec(shape, lambda i: (0,) * len(shape))

    out_t = pl.pallas_call(
        mlp_kernel,
        out_shape=jax.ShapeDtypeStruct((OUTPUT_DIM, b_pad), jnp.float32),
        grid=grid,
        in_specs=[
            pl.BlockSpec((INPUT_DIM, tile_b), lambda i: (0, i)),
            resident(w1.shape), resident(b1.shape),
            resident(w2.shape), resident(b2.shape),
            resident(w3.shape), resident(b3.shape),
        ],
        out_specs=pl.BlockSpec((OUTPUT_DIM, tile_b), lambda i: (0, i)),
        compiler_params=pltpu.CompilerParams(
            dimension_semantics=("parallel",),
            vmem_limit_bytes=32 * 1024 * 1024,  # safe on v5e/v6e/v7x; headroom for tile_b=2048
        ),
    )(x_t, w1, b1, w2, b2, w3, b3)

    # (1, b_pad) row-major reshapes directly to (b_pad, 1); drop batch padding.
    return out_t.reshape(b_pad, OUTPUT_DIM)[:B]


def init_params(key):
    # Mimics PyTorch nn.Linear default init: U(-1/sqrt(fan_in), 1/sqrt(fan_in)).
    # w1/w2 kept in (out_features, in_features) layout, stored bf16 for the MXU.
    # w3 stored as an f32 (HIDDEN2, 1) column for the VPU projection.
    def linear(key, fan_in, fan_out, w_shape, w_dtype):
        kw, kb = jax.random.split(key)
        bound = 1.0 / jnp.sqrt(fan_in)
        w = jax.random.uniform(kw, w_shape, jnp.float32, -bound, bound)
        b = jax.random.uniform(kb, (fan_out, 1), jnp.float32, -bound, bound)
        return w.astype(w_dtype), b

    k1, k2, k3 = jax.random.split(key, 3)
    w1, b1 = linear(k1, INPUT_DIM, HIDDEN1, (HIDDEN1, INPUT_DIM), jnp.bfloat16)
    w2, b2 = linear(k2, HIDDEN1, HIDDEN2, (HIDDEN2, HIDDEN1), jnp.bfloat16)
    w3, b3 = linear(k3, HIDDEN2, OUTPUT_DIM, (HIDDEN2, OUTPUT_DIM), jnp.float32)
    return (w1, b1, w2, b2, w3, b3)


def reference_forward(x, params):
    # Mirrors the kernel's numerics (bf16 matmul operands, f32 accumulation,
    # f32 VPU output projection).
    w1, b1, w2, b2, w3, b3 = params
    xt = x.T.astype(jnp.bfloat16)
    h1 = jnp.maximum(jnp.dot(w1, xt, preferred_element_type=jnp.float32) + b1, 0.0)
    h2 = jnp.maximum(jnp.dot(w2, h1.astype(jnp.bfloat16),
                             preferred_element_type=jnp.float32) + b2, 0.0)
    out = jnp.sum(w3 * h2, axis=0, keepdims=True) + b3
    return out.T  # (B, OUTPUT_DIM)


if __name__ == "__main__":
    key = jax.random.PRNGKey(0)
    k_params, k_x = jax.random.split(key)

    params = init_params(k_params)
    B = 8
    x = jax.random.normal(k_x, (B, INPUT_DIM), jnp.float32)

    out = mlp_forward(x, params)
    jax.block_until_ready(out)

    ref = reference_forward(x, params)
    assert out.shape == (B, OUTPUT_DIM)
    assert jnp.allclose(out, ref, atol=1e-3, rtol=1e-3), float(
        jnp.max(jnp.abs(out - ref)))

    print("KERNEL_OK")
</pallas_src>

<mosaic_0001>
module attributes {stable_mosaic.version = 11 : i64} {
  func.func @mlp_kernel(%arg0: i32, %arg1: memref<11x128xbf16, #tpu.memory_space<vmem>>, %arg2: memref<150x11xbf16, #tpu.memory_space<vmem>>, %arg3: memref<150x1xf32, #tpu.memory_space<vmem>>, %arg4: memref<300x150xbf16, #tpu.memory_space<vmem>>, %arg5: memref<300x1xf32, #tpu.memory_space<vmem>>, %arg6: memref<300x1xf32, #tpu.memory_space<vmem>>, %arg7: memref<1x1xf32, #tpu.memory_space<vmem>>, %arg8: memref<1x128xf32, #tpu.memory_space<vmem>>) attributes {dimension_semantics = [#tpu.dimension_semantics<parallel>], iteration_bounds = array<i64: 1>, scalar_prefetch = 0 : i64, scratch_operands = 0 : i64, tpu.core_type = #tpu.core_type<tc>, window_params = [{transform_indices = @transform_0, window_bounds = array<i64: 11, 128>}, {pipeline_mode = #tpu.pipeline_mode<synchronous>, transform_indices = @transform_1, window_bounds = array<i64: 150, 11>}, {pipeline_mode = #tpu.pipeline_mode<synchronous>, transform_indices = @transform_2, window_bounds = array<i64: 150, 1>}, {pipeline_mode = #tpu.pipeline_mode<synchronous>, transform_indices = @transform_3, window_bounds = array<i64: 300, 150>}, {pipeline_mode = #tpu.pipeline_mode<synchronous>, transform_indices = @transform_4, window_bounds = array<i64: 300, 1>}, {pipeline_mode = #tpu.pipeline_mode<synchronous>, transform_indices = @transform_5, window_bounds = array<i64: 300, 1>}, {pipeline_mode = #tpu.pipeline_mode<synchronous>, transform_indices = @transform_6, window_bounds = array<i64: 1, 1>}, {transform_indices = @transform_7, window_bounds = array<i64: 1, 128>}]} {
    %c0 = arith.constant 0 : index
    %c0_0 = arith.constant 0 : index
    %0 = vector.load %arg1[%c0, %c0_0] : memref<11x128xbf16, #tpu.memory_space<vmem>>, vector<11x128xbf16>
    %c0_1 = arith.constant 0 : index
    %c0_2 = arith.constant 0 : index
    %1 = vector.load %arg2[%c0_1, %c0_2] : memref<150x11xbf16, #tpu.memory_space<vmem>>, vector<150x11xbf16>
    %cst = arith.constant dense<0.000000e+00> : vector<150x128xf32>
    %2 = tpu.matmul %1, %0, %cst {dimension_numbers = #tpu.dot_dimension_numbers<[1], [0], [0], [1], [0, 0, 1, 1], [], []>} : vector<150x11xbf16>, vector<11x128xbf16>, vector<150x128xf32> -> vector<150x128xf32>
    %c0_3 = arith.constant 0 : index
    %c0_4 = arith.constant 0 : index
    %3 = vector.load %arg3[%c0_3, %c0_4] : memref<150x1xf32, #tpu.memory_space<vmem>>, vector<150x1xf32>
    %4 = vector.broadcast %3 : vector<150x1xf32> to vector<150x128xf32>
    %5 = arith.addf %2, %4 : vector<150x128xf32>
    %cst_5 = arith.constant 0.000000e+00 : f32
    %6 = vector.broadcast %cst_5 : f32 to vector<150x128xf32>
    %7 = arith.maximumf %5, %6 : vector<150x128xf32>
    %c0_6 = arith.constant 0 : index
    %c0_7 = arith.constant 0 : index
    %8 = vector.load %arg4[%c0_6, %c0_7] : memref<300x150xbf16, #tpu.memory_space<vmem>>, vector<300x150xbf16>
    %9 = arith.truncf %7 : vector<150x128xf32> to vector<150x128xbf16>
    %cst_8 = arith.constant dense<0.000000e+00> : vector<300x128xf32>
    %10 = tpu.matmul %8, %9, %cst_8 {dimension_numbers = #tpu.dot_dimension_numbers<[1], [0], [0], [1], [0, 0, 1, 1], [], []>} : vector<300x150xbf16>, vector<150x128xbf16>, vector<300x128xf32> -> vector<300x128xf32>
    %c0_9 = arith.constant 0 : index
    %c0_10 = arith.constant 0 : index
    %11 = vector.load %arg5[%c0_9, %c0_10] : memref<300x1xf32, #tpu.memory_space<vmem>>, vector<300x1xf32>
    %12 = vector.broadcast %11 : vector<300x1xf32> to vector<300x128xf32>
    %13 = arith.addf %10, %12 : vector<300x128xf32>
    %cst_11 = arith.constant 0.000000e+00 : f32
    %14 = vector.broadcast %cst_11 : f32 to vector<300x128xf32>
    %15 = arith.maximumf %13, %14 : vector<300x128xf32>
    %c0_12 = arith.constant 0 : index
    %c0_13 = arith.constant 0 : index
    %16 = vector.load %arg6[%c0_12, %c0_13] : memref<300x1xf32, #tpu.memory_space<vmem>>, vector<300x1xf32>
    %17 = vector.broadcast %16 : vector<300x1xf32> to vector<300x128xf32>
    %18 = arith.mulf %17, %15 : vector<300x128xf32>
    %cst_14 = arith.constant dense<0.000000e+00> : vector<128xf32>
    %19 = vector.multi_reduction <add>, %18, %cst_14 [0] : vector<300x128xf32> to vector<128xf32>
    %20 = vector.shape_cast %19 : vector<128xf32> to vector<1x128xf32>
    %c0_15 = arith.constant 0 : index
    %c0_16 = arith.constant 0 : index
    %21 = vector.load %arg7[%c0_15, %c0_16] : memref<1x1xf32, #tpu.memory_space<vmem>>, vector<1x1xf32>
    %22 = vector.broadcast %21 : vector<1x1xf32> to vector<1x128xf32>
    %23 = arith.addf %20, %22 : vector<1x128xf32>
    %c0_17 = arith.constant 0 : index
    %c0_18 = arith.constant 0 : index
    %24 = vector.load %arg8[%c0_17, %c0_18] : memref<1x128xf32, #tpu.memory_space<vmem>>, vector<1x128xf32>
    tpu.vector_store %arg8[%c0_17, %c0_18], %23 {strides = array<i32>} : memref<1x128xf32, #tpu.memory_space<vmem>>, vector<1x128xf32>,
    return
  }
  func.func @transform_0(%arg0: i32) -> (i32, i32) {
    %c0_i32 = arith.constant 0 : i32
    %c0_i32_0 = arith.constant 0 : i32
    return %c0_i32, %arg0 : i32, i32
  }
  func.func @transform_1(%arg0: i32) -> (i32, i32) {
    %c0_i32 = arith.constant 0 : i32
    %c0_i32_0 = arith.constant 0 : i32
    %c0_i32_1 = arith.constant 0 : i32
    return %c0_i32, %c0_i32_0 : i32, i32
  }
  func.func @transform_2(%arg0: i32) -> (i32, i32) {
    %c0_i32 = arith.constant 0 : i32
    %c0_i32_0 = arith.constant 0 : i32
    %c0_i32_1 = arith.constant 0 : i32
    return %c0_i32, %c0_i32_0 : i32, i32
  }
  func.func @transform_3(%arg0: i32) -> (i32, i32) {
    %c0_i32 = arith.constant 0 : i32
    %c0_i32_0 = arith.constant 0 : i32
    %c0_i32_1 = arith.constant 0 : i32
    return %c0_i32, %c0_i32_0 : i32, i32
  }
  func.func @transform_4(%arg0: i32) -> (i32, i32) {
    %c0_i32 = arith.constant 0 : i32
    %c0_i32_0 = arith.constant 0 : i32
    %c0_i32_1 = arith.constant 0 : i32
    return %c0_i32, %c0_i32_0 : i32, i32
  }
  func.func @transform_5(%arg0: i32) -> (i32, i32) {
    %c0_i32 = arith.constant 0 : i32
    %c0_i32_0 = arith.constant 0 : i32
    %c0_i32_1 = arith.constant 0 : i32
    return %c0_i32, %c0_i32_0 : i32, i32
  }
  func.func @transform_6(%arg0: i32) -> (i32, i32) {
    %c0_i32 = arith.constant 0 : i32
    %c0_i32_0 = arith.constant 0 : i32
    %c0_i32_1 = arith.constant 0 : i32
    return %c0_i32, %c0_i32_0 : i32, i32
  }
  func.func @transform_7(%arg0: i32) -> (i32, i32) {
    %c0_i32 = arith.constant 0 : i32
    %c0_i32_0 = arith.constant 0 : i32
    return %c0_i32, %arg0 : i32, i32
  }
}

</mosaic_0001>

<bundles_post_ra>
// kernel: tpu_custom_call.1
= control target key start
LH: loop header
LB: loop body
LE: loop exit
PB: predicated region body
PF: predicated region fallthrough
CT: control target
= control target key end

     0   :  { %s2576_s0 = inlined_call_operand.vmem [shape: bf16[11,128], index: 0, kind: input, shape index: {}]   ;;  %s2577_s1 = inlined_call_operand.vmem [shape: bf16[150,11], index: 1, kind: input, shape index: {}]   ;;  %s2578_s2 = inlined_call_operand.vmem [shape: f32[150,1], index: 2, kind: input, shape index: {}]   ;;  %s2579_s3 = inlined_call_operand.vmem [shape: bf16[300,150], index: 3, kind: input, shape index: {}]   ;;  %s2580_s4 = inlined_call_operand.vmem [shape: f32[300,1], index: 4, kind: input, shape index: {}]   ;;  %s2581_s5 = inlined_call_operand.vmem [shape: f32[300,1], index: 5, kind: input, shape index: {}]   ;;  %s2582_s6 = inlined_call_operand.<no memory space> [shape: f32[1,1], index: 6, kind: input, shape index: {}]   ;;  %s2583_s7 = inlined_call_operand.hbm [shape: f32[1,128], index: 7, kind: output, shape index: {}]  }
   0x1   :  { %v12_v0 = vstv %s2582_s6 }
   0x2   :  { %13 = vst [vmem:[#allocation2] sm:$0x1] %v12_v0 }
   0x3   :  { %v55_v1 = vld [vmem:[%s2578_s2 + $0x20] sm:$0xff]  ;;  %v53_v2 = vld [vmem:[%s2578_s2 + $0x10] sm:$0xff]  ;;  %vm249_vm0 = vcmask 1044480   ;;  %vm250_vm1 = vcmask 1045504   ;;  %v1743_v4 = vmov 0   ;;  %v1744_v8 = vmov 65535  }
   0x4   :  { %v51_v3 = vld [vmem:[%s2578_s2] sm:$0xff]  ;;  %1716 = vset.pattern.permute.xlu2 %v1743_v4  ;;  %1715 = vset.pattern.permute.xlu1 %v1743_v4  ;;  %v251_v9 = vsel %vm249_vm0, 4294967295, %v1744_v8  ;;  %vm218_vm2 = vcmask 89088  }
   0x5   :  { %v1462_v5 = vld [vmem:[%s2576_s0] sm:$0xf]  ;;  %v1645_v6 = vld [vmem:[%s2576_s0] sm:$0x30]  ;;  %1714 = vset.pattern.permute.xlu0 %v1743_v4  ;;  %92 = vperm.xlu2 %1716, %v55_v1   ;;  %v252_v10 = vsel %vm250_vm1, %v251_v9, 0 }
   0x6   :  { %v1463_v7 = vor.u32 %v1645_v6, %v1462_v5  ;;  %82 = vperm.xlu1 %1715, %v53_v2   ;;  %72 = vperm.xlu0 %1714, %v51_v3   ;;  %v1646_v12 = vld [vmem:[%s2577_s1] sm:$0xff] }
   0x8   :  { %v254_v11 = vand.u32 %v1463_v7, %v252_v10 }
   0xa   :  { %263 = vmatpush.bf16.msra.mxu0 %v254_v11 }
   0xb   :  { %14 = vsyncpa [#allocation4], 0  ;;  %v56_v13 = vld [vmem:[%s2578_s2 + $0x28] sm:$0xff]  ;;  %v54_v14 = vld [vmem:[%s2578_s2 + $0x18] sm:$0xff]  ;;  %vm838_vm3 = vcmask 1042432   ;;  %vm780_vm4 = vcmask 179200  }
   0xc   :  { %v52_v15 = vld [vmem:[%s2578_s2 + $0x8] sm:$0xff]  ;;  %v59_v16 = vld [vmem:[%s2578_s2 + $0x40] sm:$0xff]  ;;  %v58_v17 = vld [vmem:[%s2578_s2 + $0x38] sm:$0xff]  ;;  %vm1390_vm5 = vcmask 1043456  }
   0xd   :  { %1464 = vmatmul.msk.bf16.vlgmr.msra.gmra.mxu0 %vm218_vm2, %v1646_v12  ;;  %97 = vperm.xlu2 %1716, %v56_v13   ;;  %v57_v18 = vld [vmem:[%s2578_s2 + $0x30] sm:$0xff]  ;;  %v1647_v19 = vld [vmem:[%s2577_s1 + $0x8] sm:$0xff]  ;;  %v62_v20 = vld [vmem:[%s2578_s2 + $0x58] sm:$0xff] }
   0xe   :  { %87 = vperm.xlu1 %1715, %v54_v14   ;;  %77 = vperm.xlu0 %1714, %v52_v15   ;;  %v61_v21 = vld [vmem:[%s2578_s2 + $0x50] sm:$0xff]  ;;  %v60_v22 = vld [vmem:[%s2578_s2 + $0x48] sm:$0xff]  ;;  %v63_v25 = vld [vmem:[%s2578_s2 + $0x60] sm:$0xff] }
   0xf   :  { %v65_v23 = vld [vmem:[%s2578_s2 + $0x70] sm:$0xff]  ;;  %v64_v24 = vld [vmem:[%s2578_s2 + $0x68] sm:$0xff]  ;;  %v67_v28 = vld [vmem:[%s2578_s2 + $0x80] sm:$0xff] }
  0x10   :  { %v1648_v26 = vld [vmem:[%s2577_s1 + $0x10] sm:$0xff]  ;;  %v68_v27 = vld [vmem:[%s2578_s2 + $0x88] sm:$0xff]  ;;  %v66_v29 = vld [vmem:[%s2578_s2 + $0x78] sm:$0xff] }
  0x11   :  { %v382_v30 = vld [vmem:[%s2580_s4 + $0x8] sm:$0xff]  ;;  %v381_v31 = vld [vmem:[%s2580_s4] sm:$0xff]  ;;  %v69_v32 = vld [vmem:[%s2578_s2 + $0x90] sm:$0x3f]  ;;  %s1415_s2 = sshll.u32 %s2583_s7, 4  ;;  %s1416_s2 = int_to_ptr.hbm [resolvable:$true] %s1415_s2 }
  0x12   :  { %v1649_v33 = vld [vmem:[%s2577_s1 + $0x18] sm:$0xff]  ;;  %v385_v34 = vld [vmem:[%s2580_s4 + $0x20] sm:$0xff]  ;;  %v383_v36 = vld [vmem:[%s2580_s4 + $0x10] sm:$0xff] }
  0x13   :  { %v384_v35 = vld [vmem:[%s2580_s4 + $0x18] sm:$0xff]  ;;  %v387_v38 = vld [vmem:[%s2580_s4 + $0x30] sm:$0xff]  ;;  %v386_v39 = vld [vmem:[%s2580_s4 + $0x28] sm:$0xff] }
  0x14   :  { %v388_v37 = vld [vmem:[%s2580_s4 + $0x38] sm:$0xff]  ;;  %v1650_v40 = vld [vmem:[%s2577_s1 + $0x20] sm:$0xff]  ;;  %v391_v41 = vld [vmem:[%s2580_s4 + $0x50] sm:$0xff] }
  0x15   :  { %112 = vperm.xlu2 %1716, %v59_v16   ;;  %v390_v42 = vld [vmem:[%s2580_s4 + $0x48] sm:$0xff]  ;;  %v389_v43 = vld [vmem:[%s2580_s4 + $0x40] sm:$0xff]  ;;  %v392_v46 = vld [vmem:[%s2580_s4 + $0x58] sm:$0xff] }
  0x16   :  { %107 = vperm.xlu1 %1715, %v58_v17   ;;  %102 = vperm.xlu0 %1714, %v57_v18   ;;  %v394_v44 = vld [vmem:[%s2580_s4 + $0x68] sm:$0xff]  ;;  %v393_v45 = vld [vmem:[%s2580_s4 + $0x60] sm:$0xff]  ;;  %v396_v49 = vld [vmem:[%s2580_s4 + $0x78] sm:$0xff] }
  0x17   :  { %v1651_v47 = vld [vmem:[%s2577_s1 + $0x28] sm:$0xff]  ;;  %v397_v48 = vld [vmem:[%s2580_s4 + $0x80] sm:$0xff]  ;;  %v395_v50 = vld [vmem:[%s2580_s4 + $0x70] sm:$0xff] }
  0x18   :  { %v400_v51 = vld [vmem:[%s2580_s4 + $0x98] sm:$0xff]  ;;  %v399_v52 = vld [vmem:[%s2580_s4 + $0x90] sm:$0xff]  ;;  %v398_v53 = vld [vmem:[%s2580_s4 + $0x88] sm:$0xff] }
  0x19   :  { %v1652_v54 = vld [vmem:[%s2577_s1 + $0x30] sm:$0xff]  ;;  %v402_v56 = vld [vmem:[%s2580_s4 + $0xa8] sm:$0xff]  ;;  %v401_v57 = vld [vmem:[%s2580_s4 + $0xa0] sm:$0xff] }
  0x1a   :  { %v403_v55 = vld [vmem:[%s2580_s4 + $0xb0] sm:$0xff]  ;;  %v406_v58 = vld [vmem:[%s2580_s4 + $0xc8] sm:$0xff]  ;;  %v405_v59 = vld [vmem:[%s2580_s4 + $0xc0] sm:$0xff] }
  0x1b   :  { %v404_v60 = vld [vmem:[%s2580_s4 + $0xb8] sm:$0xff]  ;;  %v409_v62 = vld [vmem:[%s2580_s4 + $0xe0] sm:$0xff]  ;;  %v407_v0 = vld [vmem:[%s2580_s4 + $0xd0] sm:$0xff] }
  0x1c   :  { %v1653_v61 = vld [vmem:[%s2577_s1 + $0x38] sm:$0xff]  ;;  %v411_v2 = vld [vmem:[%s2580_s4 + $0xf0] sm:$0xff]  ;;  %v410_v3 = vld [vmem:[%s2580_s4 + $0xe8] sm:$0xff] }
  0x1d   :  { %1465 = vmatmul.msk.bf16.gmra.mxu0 %vm218_vm2, %v1647_v19  ;;  %127 = vperm.xlu2 %1716, %v62_v20   ;;  %v408_v63 = vld [vmem:[%s2580_s4 + $0xd8] sm:$0xff]  ;;  %v1654_v5 = vld [vmem:[%s2577_s1 + $0x40] sm:$0xff]  ;;  %v415_v8 = vld [vmem:[%s2580_s4 + $0x110] sm:$0xff] }
  0x1e   :  { %122 = vperm.xlu1 %1715, %v61_v21   ;;  %117 = vperm.xlu0 %1714, %v60_v22   ;;  %v412_v1 = vld [vmem:[%s2580_s4 + $0xf8] sm:$0xff]  ;;  %v414_v9 = vld [vmem:[%s2580_s4 + $0x108] sm:$0xff]  ;;  %v413_v10 = vld [vmem:[%s2580_s4 + $0x100] sm:$0xff] }
  0x1f   :  { %v50_v13 = vld [vmem:[%s2577_s1 + $0x48] sm:$0x7]  ;;  %v417_v16 = vld [vmem:[%s2580_s4 + $0x120] sm:$0xff]  ;;  %v416_v17 = vld [vmem:[%s2580_s4 + $0x118] sm:$0xff] }
  0x20   :  { %v418_v15 = vld [vmem:[%s2580_s4 + $0x128] sm:$0xf]  ;;  %v202_v20 = vunpack.c.l.b16 %v50_v13  ;;  %v1114_v13 = vld [vmem:[%s2581_s5 + $0xd0] sm:$0xff] }
  0x25   :  { %142 = vperm.xlu2 %1716, %v65_v23   ;;  %v212_v23 = vpack.c.b16 %v202_v20, %v202_v20 }
  0x26   :  { %137 = vperm.xlu1 %1715, %v64_v24   ;;  %132 = vperm.xlu0 %1714, %v63_v25   ;;  %v1090_v25 = vld [vmem:[%s2581_s5 + $0x10] sm:$0xff] }
  0x2d   :  { %1466 = vmatmul.msk.bf16.gmra.mxu0 %vm218_vm2, %v1648_v26  ;;  %157 = vperm.xlu2 %1716, %v68_v27   ;;  %v1089_v26 = vld [vmem:[%s2581_s5 + $0x8] sm:$0xff]  ;;  %v1088_v27 = vld [vmem:[%s2581_s5] sm:$0xff] }
  0x2e   :  { %152 = vperm.xlu1 %1715, %v67_v28   ;;  %147 = vperm.xlu0 %1714, %v66_v29  }
  0x35   :  { %426 = vperm.xlu2 %1716, %v382_v30  }
  0x36   :  { %421 = vperm.xlu1 %1715, %v381_v31   ;;  %162 = vperm.xlu0 %1714, %v69_v32   ;;  %v1093_v32 = vld [vmem:[%s2581_s5 + $0x28] sm:$0xff] }
  0x3d   :  { %1467 = vmatmul.msk.bf16.gmra.mxu0 %vm218_vm2, %v1649_v33  ;;  %441 = vperm.xlu2 %1716, %v385_v34   ;;  %v1092_v33 = vld [vmem:[%s2581_s5 + $0x20] sm:$0xff]  ;;  %v1091_v34 = vld [vmem:[%s2581_s5 + $0x18] sm:$0xff] }
  0x3e   :  { %436 = vperm.xlu1 %1715, %v384_v35   ;;  %431 = vperm.xlu0 %1714, %v383_v36  }
  0x45   :  { %456 = vperm.xlu2 %1716, %v388_v37  }
  0x46   :  { %451 = vperm.xlu1 %1715, %v387_v38   ;;  %446 = vperm.xlu0 %1714, %v386_v39  }
  0x4d   :  { %1468 = vmatmul.msk.bf16.gmra.mxu0 %vm218_vm2, %v1650_v40  ;;  %471 = vperm.xlu2 %1716, %v391_v41   ;;  %v1096_v40 = vld [vmem:[%s2581_s5 + $0x40] sm:$0xff]  ;;  %v1095_v41 = vld [vmem:[%s2581_s5 + $0x38] sm:$0xff] }
  0x4e   :  { %466 = vperm.xlu1 %1715, %v390_v42   ;;  %461 = vperm.xlu0 %1714, %v389_v43   ;;  %v1094_v42 = vld [vmem:[%s2581_s5 + $0x30] sm:$0xff] }
  0x55   :  { %486 = vperm.xlu2 %1716, %v394_v44  }
  0x56   :  { %481 = vperm.xlu1 %1715, %v393_v45   ;;  %476 = vperm.xlu0 %1714, %v392_v46  }
  0x5d   :  { %1469 = vmatmul.msk.bf16.gmra.mxu0 %vm218_vm2, %v1651_v47  ;;  %501 = vperm.xlu2 %1716, %v397_v48   ;;  %v1099_v47 = vld [vmem:[%s2581_s5 + $0x58] sm:$0xff]  ;;  %v1098_v48 = vld [vmem:[%s2581_s5 + $0x50] sm:$0xff] }
  0x5e   :  { %496 = vperm.xlu1 %1715, %v396_v49   ;;  %491 = vperm.xlu0 %1714, %v395_v50   ;;  %v1097_v49 = vld [vmem:[%s2581_s5 + $0x48] sm:$0xff] }
  0x5f   :  { %v93_v38 = vpop.permute.xlu2 %92 }
  0x65   :  { %516 = vperm.xlu2 %1716, %v400_v51  }
  0x66   :  { %511 = vperm.xlu1 %1715, %v399_v52   ;;  %506 = vperm.xlu0 %1714, %v398_v53  }
  0x67   :  { %v98_v44 = vpop.permute.xlu2 %97 }
  0x6d   :  { %1470 = vmatmul.msk.bf16.gmra.mxu0 %vm218_vm2, %v1652_v54  ;;  %531 = vperm.xlu2 %1716, %v403_v55   ;;  %v1102_v54 = vld [vmem:[%s2581_s5 + $0x70] sm:$0xff]  ;;  %v1101_v55 = vld [vmem:[%s2581_s5 + $0x68] sm:$0xff] }
  0x6e   :  { %526 = vperm.xlu1 %1715, %v402_v56   ;;  %521 = vperm.xlu0 %1714, %v401_v57   ;;  %v1100_v56 = vld [vmem:[%s2581_s5 + $0x60] sm:$0xff] }
  0x75   :  { %546 = vperm.xlu2 %1716, %v406_v58  }
  0x76   :  { %541 = vperm.xlu1 %1715, %v405_v59   ;;  %536 = vperm.xlu0 %1714, %v404_v60  }
  0x78   :  { %v73_v4 = vpop.permute.xlu0 %72  ;;  %v83_v22 = vpop.permute.xlu1 %82 }
  0x7d   :  { %1471 = vmatmul.msk.bf16.gmra.mxu0 %vm218_vm2, %v1653_v61  ;;  %561 = vperm.xlu2 %1716, %v409_v62   ;;  %v1105_v62 = vld [vmem:[%s2581_s5 + $0x88] sm:$0xff] }
  0x7e   :  { %556 = vperm.xlu1 %1715, %v408_v63   ;;  %551 = vperm.xlu0 %1714, %v407_v0   ;;  %v1104_v63 = vld [vmem:[%s2581_s5 + $0x80] sm:$0xff]  ;;  %v1103_v0 = vld [vmem:[%s2581_s5 + $0x78] sm:$0xff] }
  0x80   :  { %v78_v11 = vpop.permute.xlu0 %77  ;;  %v88_v29 = vpop.permute.xlu1 %87 }
  0x85   :  { %576 = vperm.xlu2 %1716, %v412_v1  }
  0x86   :  { %571 = vperm.xlu1 %1715, %v411_v2   ;;  %566 = vperm.xlu0 %1714, %v410_v3  }
  0x88   :  { %v103_v57 = vpop.permute.xlu0 %102  ;;  %v108_v59 = vpop.permute.xlu1 %107 }
  0x8a   :  { %v265_v6 = vpop.f32.mrf.mxu0 }
  0x8b   :  { %v266_v7 = vadd.f32 %v265_v6, %v73_v4  ;;  %v1107_v6 = vld [vmem:[%s2581_s5 + $0x98] sm:$0xff] }
  0x8d   :  { %1472 = vmatmul.msk.bf16.gmra.mxu0 %vm218_vm2, %v1654_v5  ;;  %591 = vperm.xlu2 %1716, %v415_v8   ;;  %v314_v18 = vmax.f32 %v266_v7, 0.0  ;;  %v1108_v5 = vld [vmem:[%s2581_s5 + $0xa0] sm:$0xff]  ;;  %v1106_v7 = vld [vmem:[%s2581_s5 + $0x90] sm:$0xff] }
  0x8e   :  { %586 = vperm.xlu1 %1715, %v414_v9   ;;  %581 = vperm.xlu0 %1714, %v413_v10   ;;  %v1111_v9 = vld [vmem:[%s2581_s5 + $0xb8] sm:$0xff]  ;;  %v1110_v10 = vld [vmem:[%s2581_s5 + $0xb0] sm:$0xff] }
  0x92   :  { %v267_v12 = vpop.f32.mrf.mxu0 }
  0x93   :  { %v268_v14 = vadd.f32 %v267_v12, %v78_v11  ;;  %v1109_v11 = vld [vmem:[%s2581_s5 + $0xa8] sm:$0xff] }
  0x95   :  { %v315_v19 = vmax.f32 %v268_v14, 0.0  ;;  %606 = vperm.xlu2 %1716, %v418_v15   ;;  %v1113_v14 = vld [vmem:[%s2581_s5 + $0xc8] sm:$0xff]  ;;  %v1112_v15 = vld [vmem:[%s2581_s5 + $0xc0] sm:$0xff] }
  0x96   :  { %601 = vperm.xlu1 %1715, %v417_v16   ;;  %596 = vperm.xlu0 %1714, %v416_v17   ;;  %v1117_v17 = vld [vmem:[%s2581_s5 + $0xe8] sm:$0xff] }
  0x97   :  { %v2005_v21 = vpack.c.bf16 %v315_v19, %v314_v18  ;;  %v1116_v18 = vld [vmem:[%s2581_s5 + $0xe0] sm:$0xff]  ;;  %v1115_v19 = vld [vmem:[%s2581_s5 + $0xd8] sm:$0xff] }
  0x9a   :  { %v270_v24 = vpop.f32.mrf.mxu0 }
  0x9b   :  { %v271_v28 = vadd.f32 %v270_v24, %v83_v22  ;;  %v1120_v22 = vld [vmem:[%s2581_s5 + $0x100] sm:$0xff]  ;;  %v1119_v24 = vld [vmem:[%s2581_s5 + $0xf8] sm:$0xff] }
  0x9d   :  { %1473 = vmatmul.msk.bf16.gmra.mxu0 %vm218_vm2, %v212_v23  ;;  %1138 = vperm.xlu2 %1716, %v1090_v25   ;;  %v316_v35 = vmax.f32 %v271_v28, 0.0  ;;  %v113_v23 = vpop.permute.xlu2 %112  ;;  %v1118_v25 = vld [vmem:[%s2581_s5 + $0xf0] sm:$0xff]  ;;  %v1123_v28 = vld [vmem:[%s2581_s5 + $0x118] sm:$0xff] }
  0x9e   :  { %1133 = vperm.xlu1 %1715, %v1089_v26   ;;  %1128 = vperm.xlu0 %1714, %v1088_v27   ;;  %v118_v26 = vpop.permute.xlu0 %117 }
  0xa2   :  { %v272_v30 = vpop.f32.mrf.mxu0 }
  0xa3   :  { %v273_v31 = vadd.f32 %v272_v30, %v88_v29  ;;  %v1122_v29 = vld [vmem:[%s2581_s5 + $0x110] sm:$0xff]  ;;  %v1121_v30 = vld [vmem:[%s2581_s5 + $0x108] sm:$0xff] }
  0xa5   :  { %v317_v36 = vmax.f32 %v273_v31, 0.0  ;;  %1153 = vperm.xlu2 %1716, %v1093_v32   ;;  %v128_v31 = vpop.permute.xlu2 %127  ;;  %v123_v32 = vpop.permute.xlu1 %122 }
  0xa6   :  { %1148 = vperm.xlu1 %1715, %v1092_v33   ;;  %1143 = vperm.xlu0 %1714, %v1091_v34   ;;  %v133_v33 = vpop.permute.xlu0 %132 }
  0xa7   :  { %v2026_v37 = vpack.c.bf16 %v317_v36, %v316_v35  ;;  %v1399_v35 = vld [vmem:[#allocation2] sm:$0x1]  ;;  %v1125_v36 = vld [vmem:[%s2581_s5 + $0x128] sm:$0xf] }
  0xaa   :  { %v275_v39 = vpop.f32.mrf.mxu0 }
  0xab   :  { %v276_v43 = vadd.f32 %v275_v39, %v93_v38  ;;  %v1124_v38 = vld [vmem:[%s2581_s5 + $0x120] sm:$0xff] }
  0xad   :  { %1168 = vperm.xlu2 %1716, %v1096_v40   ;;  %v318_v50 = vmax.f32 %v276_v43, 0.0  ;;  %v143_v39 = vpop.permute.xlu2 %142  ;;  %v138_v40 = vpop.permute.xlu1 %137 }
  0xae   :  { %1163 = vperm.xlu1 %1715, %v1095_v41   ;;  %1158 = vperm.xlu0 %1714, %v1094_v42   ;;  %v148_v42 = vpop.permute.xlu0 %147 }
  0xb2   :  { %v277_v45 = vpop.f32.mrf.mxu0 }
  0xb3   :  { %v278_v46 = vadd.f32 %v277_v45, %v98_v44 }
  0xb5   :  { %v319_v51 = vmax.f32 %v278_v46, 0.0  ;;  %1183 = vperm.xlu2 %1716, %v1099_v47  }
  0xb6   :  { %1178 = vperm.xlu1 %1715, %v1098_v48   ;;  %1173 = vperm.xlu0 %1714, %v1097_v49  }
  0xb7   :  { %v2046_v52 = vpack.c.bf16 %v319_v51, %v318_v50 }
  0xba   :  { %v280_v53 = vpop.f32.mrf.mxu0 }
  0xbb   :  { %v281_v58 = vadd.f32 %v280_v53, %v103_v57 }
  0xbd   :  { %1198 = vperm.xlu2 %1716, %v1102_v54   ;;  %v320_v1 = vmax.f32 %v281_v58, 0.0 }
  0xbe   :  { %1193 = vperm.xlu1 %1715, %v1101_v55   ;;  %1188 = vperm.xlu0 %1714, %v1100_v56  }
  0xc2   :  { %v282_v60 = vpop.f32.mrf.mxu0 }
  0xc3   :  { %v283_v61 = vadd.f32 %v282_v60, %v108_v59 }
  0xc5   :  { %v321_v2 = vmax.f32 %v283_v61, 0.0  ;;  %1213 = vperm.xlu2 %1716, %v1105_v62  }
  0xc6   :  { %1208 = vperm.xlu1 %1715, %v1104_v63   ;;  %1203 = vperm.xlu0 %1714, %v1103_v0  }
  0xc7   :  { %v2066_v3 = vpack.c.bf16 %v321_v2, %v320_v1  ;;  %v163_v2 = vpop.permute.xlu0 %162 }
  0xca   :  { %v2068_v4 = vpop.f32.mrf.mxu0 }
  0xcb   :  { %v286_v59 = vadd.f32 %v2068_v4, %v113_v23 }
  0xcd   :  { %1228 = vperm.xlu2 %1716, %v1108_v5   ;;  %v322_v63 = vmax.f32 %v286_v59, 0.0  ;;  %v158_v5 = vpop.permute.xlu2 %157  ;;  %v1502_v59 = vld [vmem:[%s2579_s3 + $0x38] sm:$0xf0] }
  0xce   :  { %1223 = vperm.xlu1 %1715, %v1107_v6   ;;  %1218 = vperm.xlu0 %1714, %v1106_v7  }
  0xd2   :  { %v2079_v8 = vpop.f32.mrf.mxu0 }
  0xd3   :  { %v288_v56 = vadd.f32 %v2079_v8, %v118_v26  ;;  %v153_v8 = vpop.permute.xlu1 %152 }
  0xd5   :  { %1243 = vperm.xlu2 %1716, %v1111_v9   ;;  %v323_v61 = vmax.f32 %v288_v56, 0.0  ;;  %v1604_v56 = vld [vmem:[%s2579_s3 + $0x100] sm:$0xf] }
  0xd6   :  { %1238 = vperm.xlu1 %1715, %v1110_v10   ;;  %1233 = vperm.xlu0 %1714, %v1109_v11  }
  0xd7   :  { %v375_v1 = vpack.c.bf16 %v323_v61, %v322_v63 }
  0xda   :  { %v290_v12 = vpop.f32.mrf.mxu0 }
  0xdb   :  { %v291_v53 = vadd.f32 %v290_v12, %v123_v32  ;;  %v1476_v12 = vld [vmem:[%s2579_s3] sm:$0xf] }
  0xdd   :  { %1258 = vperm.xlu2 %1716, %v1114_v13   ;;  %v324_v60 = vmax.f32 %v291_v53, 0.0 }
  0xde   :  { %1253 = vperm.xlu1 %1715, %v1113_v14   ;;  %1248 = vperm.xlu0 %1714, %v1112_v15   ;;  %v1484_v14 = vld [vmem:[%s2579_s3 + $0x10] sm:$0xf]  ;;  %v1658_v15 = vld [vmem:[%s2579_s3 + $0x14] sm:$0xf0] }
  0xe2   :  { %v292_v16 = vpop.f32.mrf.mxu0 }
  0xe3   :  { %v293_v49 = vadd.f32 %v292_v16, %v128_v31  ;;  %v1580_v16 = vld [vmem:[%s2579_s3 + $0xd0] sm:$0xf]  ;;  %v1486_v31 = vld [vmem:[%s2579_s3 + $0x18] sm:$0xf0] }
  0xe5   :  { %1273 = vperm.xlu2 %1716, %v1117_v17   ;;  %v325_v57 = vmax.f32 %v293_v49, 0.0  ;;  %v1682_v17 = vld [vmem:[%s2579_s3 + $0xd4] sm:$0xf0] }
  0xe6   :  { %1268 = vperm.xlu1 %1715, %v1116_v18   ;;  %1263 = vperm.xlu0 %1714, %v1115_v19   ;;  %v1581_v26 = vor.u32 %v1682_v17, %v1580_v16  ;;  %v1524_v16 = vld [vmem:[%s2579_s3 + $0x60] sm:$0xf]  ;;  %v1668_v17 = vld [vmem:[%s2579_s3 + $0x64] sm:$0xf0] }
  0xe7   :  { %v376_v62 = vpack.c.bf16 %v325_v57, %v324_v60  ;;  %v1688_v57 = vld [vmem:[%s2579_s3 + $0x104] sm:$0xf0] }
  0xe8   :  { %v1605_v63 = vor.u32 %v1688_v57, %v1604_v56  ;;  %v1683_v56 = vld [vmem:[%s2579_s3 + $0xe4] sm:$0xf]  ;;  %v1590_v57 = vld [vmem:[%s2579_s3 + $0xe8] sm:$0xf0] }
  0xea   :  { %v295_v20 = vpop.f32.mrf.mxu0 }
  0xeb   :  { %v296_v46 = vadd.f32 %v295_v20, %v133_v33  ;;  %v1655_v20 = vld [vmem:[%s2579_s3 + $0x4] sm:$0xf] }
  0xed   :  { %1288 = vperm.xlu2 %1716, %v1120_v22   ;;  %v326_v54 = vmax.f32 %v296_v46, 0.0  ;;  %v1478_v22 = vld [vmem:[%s2579_s3 + $0x8] sm:$0xf0] }
  0xee   :  { %1283 = vperm.xlu1 %1715, %v1119_v24   ;;  %1278 = vperm.xlu0 %1714, %v1118_v25   ;;  %v1485_v25 = vor.u32 %v1658_v15, %v1484_v14 }
  0xf2   :  { %v297_v27 = vpop.f32.mrf.mxu0 }
  0xf3   :  { %v298_v44 = vadd.f32 %v297_v27, %v138_v40  ;;  %v1481_v27 = vor.u32 %v1655_v20, %v1478_v22  ;;  %v1500_v40 = vld [vmem:[%s2579_s3 + $0x30] sm:$0xf]  ;;  %v1692_v22 = vld [vmem:[%s2579_s3 + $0x124] sm:$0x30] }
  0xf5   :  { %1303 = vperm.xlu2 %1716, %v1123_v28   ;;  %v327_v50 = vmax.f32 %v298_v44, 0.0  ;;  %v1660_v28 = vld [vmem:[%s2579_s3 + $0x24] sm:$0xf0]  ;;  %v1659_v44 = vld [vmem:[%s2579_s3 + $0x24] sm:$0xf] }
  0xf6   :  { %1298 = vperm.xlu1 %1715, %v1122_v29   ;;  %1293 = vperm.xlu0 %1714, %v1121_v30   ;;  %v1684_v29 = vld [vmem:[%s2579_s3 + $0xe4] sm:$0xf0]  ;;  %v1657_v30 = vld [vmem:[%s2579_s3 + $0x14] sm:$0xf] }
  0xf7   :  { %v377_v58 = vpack.c.bf16 %v327_v50, %v326_v54  ;;  %v1508_v54 = vld [vmem:[%s2579_s3 + $0x40] sm:$0xf] }
  0xfa   :  { %v300_v34 = vpop.f32.mrf.mxu0 }
  0xfb   :  { %v301_v41 = vadd.f32 %v300_v34, %v143_v39  ;;  %v1489_v34 = vor.u32 %v1657_v30, %v1486_v31  ;;  %v2196_v39 = vpop.permute.xlu0 %431  ;;  %v1670_v30 = vld [vmem:[%s2579_s3 + $0x74] sm:$0xf0]  ;;  %v1681_v31 = vld [vmem:[%s2579_s3 + $0xd4] sm:$0xf] }
  0xfd   :  { %1402 = vperm.xlu2 %1716, %v1399_v35   ;;  %v328_v47 = vmax.f32 %v301_v41, 0.0  ;;  %v2189_v35 = vpop.permute.xlu1 %421  ;;  %v1662_v41 = vld [vmem:[%s2579_s3 + $0x34] sm:$0xf0] }
  0xfe   :  { %1313 = vperm.xlu1 %1715, %v1125_v36   ;;  %1308 = vperm.xlu0 %1714, %v1124_v38   ;;  %v2192_v36 = vpop.permute.xlu2 %426  ;;  %v1501_v46 = vor.u32 %v1662_v41, %v1500_v40 }
 0x102   :  { %v302_v43 = vpop.f32.mrf.mxu0 }
 0x103   :  { %v303_v45 = vadd.f32 %v302_v43, %v148_v42  ;;  %v1596_v42 = vld [vmem:[%s2579_s3 + $0xf0] sm:$0xf]  ;;  %v1686_v43 = vld [vmem:[%s2579_s3 + $0xf4] sm:$0xf0] }
 0x105   :  { %v329_v48 = vmax.f32 %v303_v45, 0.0  ;;  %v2194_v38 = vpop.permute.xlu1 %436  ;;  %v1494_v45 = vld [vmem:[%s2579_s3 + $0x28] sm:$0xf0] }
 0x106   :  { %v2216_v49 = vpop.permute.xlu2 %441 }
 0x107   :  { %v378_v51 = vpack.c.bf16 %v329_v48, %v328_v47  ;;  %v1597_v47 = vor.u32 %v1686_v43, %v1596_v42  ;;  %v1497_v48 = vor.u32 %v1659_v44, %v1494_v45 }
 0x109   :  { %842 = vmatpush.bf16.msrb.mxu0 %v378_v51  ;;  %1693 = vmatpush.bf16.msra.mxu1 %v378_v51 }
 0x10a   :  { %1694 = vmatpush.bf16.msra.mxu3 %v378_v51  ;;  %v305_v55 = vpop.f32.mrf.mxu0  ;;  %v2221_v51 = vpop.permute.xlu0 %446 }
 0x10b   :  { %v306_v10 = vadd.f32 %v305_v55, %v153_v8  ;;  %v1664_v55 = vld [vmem:[%s2579_s3 + $0x44] sm:$0xf0]  ;;  %v1690_v8 = vld [vmem:[%s2579_s3 + $0x114] sm:$0xf0] }
 0x10d   :  { %843 = vmatpush.bf16.msrb.mxu0 %v377_v58  ;;  %1695 = vmatpush.bf16.msra.mxu1 %v377_v58  ;;  %v330_v18 = vmax.f32 %v306_v10, 0.0  ;;  %v2219_v50 = vpop.permute.xlu1 %451  ;;  %v1510_v10 = vld [vmem:[%s2579_s3 + $0x48] sm:$0xf0] }
 0x10e   :  { %1696 = vmatpush.bf16.msra.mxu3 %v377_v58  ;;  %v2223_v53 = vpop.permute.xlu2 %456  ;;  %v1661_v58 = vld [vmem:[%s2579_s3 + $0x34] sm:$0xf] }
 0x111   :  { %844 = vmatpush.bf16.msrb.mxu0 %v376_v62  ;;  %1697 = vmatpush.bf16.msra.mxu1 %v376_v62 }
 0x112   :  { %1698 = vmatpush.bf16.msra.mxu3 %v376_v62  ;;  %v307_v0 = vpop.f32.mrf.mxu0  ;;  %v2245_v61 = vpop.permute.xlu0 %461  ;;  %v1509_v62 = vor.u32 %v1664_v55, %v1508_v54  ;;  %v1540_v54 = vld [vmem:[%s2579_s3 + $0x80] sm:$0xf]  ;;  %v1672_v55 = vld [vmem:[%s2579_s3 + $0x84] sm:$0xf0] }
 0x113   :  { %v308_v7 = vadd.f32 %v307_v0, %v158_v5  ;;  %v1505_v0 = vor.u32 %v1661_v58, %v1502_v59  ;;  %v1516_v5 = vld [vmem:[%s2579_s3 + $0x50] sm:$0xf]  ;;  %v1669_v58 = vld [vmem:[%s2579_s3 + $0x74] sm:$0xf]  ;;  %v1534_v59 = vld [vmem:[%s2579_s3 + $0x78] sm:$0xf0] }
 0x115   :  { %845 = vmatpush.bf16.msrb.mxu0 %v375_v1  ;;  %1699 = vmatpush.bf16.msra.mxu1 %v375_v1  ;;  %v331_v13 = vmax.f32 %v308_v7, 0.0  ;;  %v2243_v60 = vpop.permute.xlu1 %466  ;;  %v1612_v7 = vld [vmem:[%s2579_s3 + $0x110] sm:$0xf] }
 0x116   :  { %1700 = vmatpush.bf16.msra.mxu3 %v375_v1  ;;  %v2248_v1 = vpop.permute.xlu2 %471 }
 0x117   :  { %v379_v23 = vpack.c.bf16 %v331_v13, %v330_v18  ;;  %v1620_v18 = vld [vmem:[%s2579_s3 + $0x120] sm:$0xf] }
 0x119   :  { %846 = vmatpush.bf16.msrb.mxu0 %v2066_v3  ;;  %1701 = vmatpush.bf16.msra.mxu1 %v2066_v3 }
 0x11a   :  { %1702 = vmatpush.bf16.msra.mxu3 %v2066_v3  ;;  %v310_v4 = vpop.f32.mrf.mxu0  ;;  %v1656_v3 = vld [vmem:[%s2579_s3 + $0x4] sm:$0xf0] }
 0x11b   :  { %v311_v6 = vadd.f32 %v310_v4, %v163_v2  ;;  %v1477_v24 = vor.u32 %v1656_v3, %v1476_v12  ;;  %v2252_v4 = vpop.permute.xlu0 %476  ;;  %v1613_v3 = vor.u32 %v1690_v8, %v1612_v7 }
 0x11d   :  { %v332_v9 = vmax.f32 %v311_v6, 0.0  ;;  %847 = vmatpush.bf16.msrb.mxu0 %v2046_v52  ;;  %1703 = vmatpush.bf16.msra.mxu1 %v2046_v52  ;;  %v2250_v2 = vpop.permute.xlu1 %481  ;;  %v1666_v6 = vld [vmem:[%s2579_s3 + $0x54] sm:$0xf0] }
 0x11e   :  { %1704 = vmatpush.bf16.msra.mxu3 %v2046_v52  ;;  %v2272_v12 = vpop.permute.xlu2 %486 }
 0x11f   :  { %v380_v11 = vpack.c.bf16 %v332_v9, %v332_v9  ;;  %v1663_v9 = vld [vmem:[%s2579_s3 + $0x44] sm:$0xf] }
 0x120   :  { %v1513_v13 = vor.u32 %v1663_v9, %v1510_v10  ;;  %v1548_v9 = vld [vmem:[%s2579_s3 + $0x90] sm:$0xf]  ;;  %v1674_v10 = vld [vmem:[%s2579_s3 + $0x94] sm:$0xf0] }
 0x121   :  { %848 = vmatpush.bf16.msrb.mxu0 %v2026_v37  ;;  %1705 = vmatpush.bf16.msra.mxu1 %v2026_v37  ;;  %v840_v52 = vsel %vm838_vm3, %v380_v11, 0  ;;  %v1517_v11 = vor.u32 %v1666_v6, %v1516_v5 }
 0x122   :  { %1706 = vmatpush.bf16.msra.mxu3 %v2026_v37  ;;  %v312_v19 = vpop.f32.mrf.mxu0  ;;  %952 = vmatpush.bf16.msra.mxu2 %v840_v52  ;;  %v1492_v37 = vld [vmem:[%s2579_s3 + $0x20] sm:$0xf] }
 0x123   :  { %v1493_v32 = vor.u32 %v1660_v28, %v1492_v37  ;;  %v2276_v15 = vpop.permute.xlu0 %491 }
 0x125   :  { %849 = vmatpush.bf16.msrb.mxu0 %v2005_v21  ;;  %1707 = vmatpush.bf16.msra.mxu1 %v2005_v21  ;;  %v2274_v14 = vpop.permute.xlu1 %496 }
 0x126   :  { %1708 = vmatpush.bf16.msra.mxu3 %v2005_v21  ;;  %953 = vmatpush.bf16.msra.mxu2 %v379_v23  ;;  %v1588_v21 = vld [vmem:[%s2579_s3 + $0xe0] sm:$0xf] }
 0x127   :  { %v1589_v33 = vor.u32 %v1684_v29, %v1588_v21  ;;  %v1532_v29 = vld [vmem:[%s2579_s3 + $0x70] sm:$0xf] }
 0x128   :  { %850 = vmatmul.bf16.vlgmr.msrb.gmra.mxu0 %v1477_v24  ;;  %855 = vmatmul.bf16.vlgmr.msra.gmra.mxu1 %v1485_v25  ;;  %v1518_v24 = vld [vmem:[%s2579_s3 + $0x58] sm:$0xf0]  ;;  %v1525_v25 = vor.u32 %v1668_v17, %v1524_v16  ;;  %v1533_v41 = vor.u32 %v1670_v30, %v1532_v29  ;;  %v1542_v16 = vld [vmem:[%s2579_s3 + $0x88] sm:$0xf0] }
 0x129   :  { %915 = vmatmul.bf16.vlgmr.msra.gmra.mxu3 %v1581_v26  ;;  %1626 = vmatmul.msk.bf16.vlgmr.msra.gmra.mxu2 %vm780_vm4, %v1481_v27  ;;  %v1621_v26 = vor.u32 %v1692_v22, %v1620_v18  ;;  %v1549_v22 = vor.u32 %v1674_v10, %v1548_v9 }
 0x12a   :  { %1709 = vmatpush.bf16.msrb.mxu3 %v840_v52  ;;  %v2279_v52 = vpop.permute.xlu2 %501 }
 0x12b   :  { %v2292_v20 = vpop.permute.xlu0 %506 }
 0x12d   :  { %v2290_v19 = vpop.permute.xlu1 %511 }
 0x12e   :  { %1710 = vmatpush.bf16.msrb.mxu3 %v379_v23  ;;  %v1665_v23 = vld [vmem:[%s2579_s3 + $0x54] sm:$0xf] }
 0x12f   :  { %v1521_v27 = vor.u32 %v1665_v23, %v1518_v24 }
 0x132   :  { %v2303_v37 = vpop.permute.xlu2 %516 }
 0x133   :  { %v2308_v21 = vpop.permute.xlu0 %521 }
 0x135   :  { %v2306_v28 = vpop.permute.xlu1 %526 }
 0x138   :  { %860 = vmatmul.bf16.gmra.mxu1 %v1493_v32  ;;  %v1582_v32 = vld [vmem:[%s2579_s3 + $0xd8] sm:$0xf0] }
 0x139   :  { %920 = vmatmul.bf16.gmra.mxu3 %v1589_v33  ;;  %1627 = vmatmul.msk.bf16.gmra.mxu2 %vm780_vm4, %v1489_v34  ;;  %v1667_v33 = vld [vmem:[%s2579_s3 + $0x64] sm:$0xf]  ;;  %v1526_v34 = vld [vmem:[%s2579_s3 + $0x68] sm:$0xf0]  ;;  %v1585_v42 = vor.u32 %v1681_v31, %v1582_v32 }
 0x13a   :  { %v2328_v40 = vpop.permute.xlu2 %531  ;;  %v1529_v43 = vor.u32 %v1667_v33, %v1526_v34 }
 0x13b   :  { %v2332_v45 = vpop.permute.xlu0 %536 }
 0x13d   :  { %v2330_v44 = vpop.permute.xlu1 %541 }
 0x148   :  { %865 = vmatmul.bf16.gmra.mxu1 %v1501_v46  ;;  %v2336_v46 = vpop.permute.xlu2 %546 }
 0x149   :  { %925 = vmatmul.bf16.gmra.mxu3 %v1597_v47  ;;  %1628 = vmatmul.msk.bf16.gmra.mxu2 %vm780_vm4, %v1497_v48  ;;  %v2338_v47 = vpop.permute.xlu1 %556  ;;  %v2340_v48 = vpop.permute.xlu0 %551 }
 0x150   :  { %v2360_v5 = vpop.permute.xlu2 %561 }
 0x151   :  { %v2364_v6 = vpop.permute.xlu1 %571  ;;  %v2366_v7 = vpop.permute.xlu0 %566 }
 0x158   :  { %870 = vmatmul.bf16.gmra.mxu1 %v1509_v62  ;;  %v1541_v62 = vor.u32 %v1672_v55, %v1540_v54  ;;  %v2368_v8 = vpop.permute.xlu2 %576  ;;  %v1676_v54 = vld [vmem:[%s2579_s3 + $0xa4] sm:$0xf0]  ;;  %v1687_v55 = vld [vmem:[%s2579_s3 + $0x104] sm:$0xf] }
 0x159   :  { %930 = vmatmul.bf16.gmra.mxu3 %v1605_v63  ;;  %1629 = vmatmul.msk.bf16.gmra.mxu2 %vm780_vm4, %v1505_v0  ;;  %v1593_v63 = vor.u32 %v1683_v56, %v1590_v57  ;;  %v1537_v0 = vor.u32 %v1669_v58, %v1534_v59  ;;  %v2388_v17 = vpop.permute.xlu1 %586  ;;  %v2390_v18 = vpop.permute.xlu0 %581  ;;  %v1606_v56 = vld [vmem:[%s2579_s3 + $0x108] sm:$0xf0]  ;;  %v1550_v57 = vld [vmem:[%s2579_s3 + $0x98] sm:$0xf0] }
 0x15a   :  { %2584 = vst [vmem:[#allocation6_spill] sm:$0xff] %v2388_v17 }
 0x15b   :  { %2585 = vst [vmem:[#allocation7_spill] sm:$0xff] %v2390_v18 }
 0x161   :  { %v2398_v32 = vpop.permute.xlu1 %601  ;;  %v2400_v33 = vpop.permute.xlu0 %596 }
 0x162   :  { %2587 = vst [vmem:[#allocation9_spill] sm:$0xff] %v2398_v32 }
 0x163   :  { %2588 = vst [vmem:[#allocation10_spill] sm:$0xff] %v2400_v33 }
 0x168   :  { %875 = vmatmul.bf16.gmra.mxu1 %v1517_v11  ;;  %v1685_v11 = vld [vmem:[%s2579_s3 + $0xf4] sm:$0xf] }
 0x169   :  { %935 = vmatmul.bf16.gmra.mxu3 %v1613_v3  ;;  %1630 = vmatmul.msk.bf16.gmra.mxu2 %vm780_vm4, %v1513_v13  ;;  %v1598_v3 = vld [vmem:[%s2579_s3 + $0xf8] sm:$0xf0]  ;;  %v1671_v13 = vld [vmem:[%s2579_s3 + $0x84] sm:$0xf] }
 0x16a   :  { %v1601_v24 = vor.u32 %v1685_v11, %v1598_v3  ;;  %v1609_v11 = vor.u32 %v1687_v55, %v1606_v56 }
 0x178   :  { %880 = vmatmul.bf16.gmra.mxu1 %v1525_v25  ;;  %v1545_v25 = vor.u32 %v1671_v13, %v1542_v16 }
 0x179   :  { %940 = vmatmul.bf16.gmra.mxu3 %v1621_v26  ;;  %1631 = vmatmul.msk.bf16.gmra.mxu2 %vm780_vm4, %v1521_v27  ;;  %v2394_v27 = vpop.permute.xlu2 %591 }
 0x17a   :  { %2586 = vst [vmem:[#allocation8_spill] sm:$0xff] %v2394_v27 }
 0x181   :  { %v2424_v13 = vpop.permute.xlu2 %606 }
 0x182   :  { %2589 = vst [vmem:[#allocation11_spill] sm:$0xff] %v2424_v13 }
 0x188   :  { %885 = vmatmul.bf16.gmra.mxu1 %v1533_v41 }
 0x189   :  { %1639 = vmatmul.msk.bf16.vlgmr.msrb.gmra.mxu3 %vm780_vm4, %v1585_v42  ;;  %1632 = vmatmul.msk.bf16.gmra.mxu2 %vm780_vm4, %v1529_v43  ;;  %v1556_v43 = vld [vmem:[%s2579_s3 + $0xa0] sm:$0xf]  ;;  %v1139_v55 = vpop.permute.xlu2 %1138 }
 0x198   :  { %890 = vmatmul.bf16.gmra.mxu1 %v1541_v62 }
 0x199   :  { %1640 = vmatmul.msk.bf16.gmra.mxu3 %vm780_vm4, %v1593_v63  ;;  %1633 = vmatmul.msk.bf16.gmra.mxu2 %vm780_vm4, %v1537_v0  ;;  %v1557_v63 = vor.u32 %v1676_v54, %v1556_v43 }
 0x1a5   :  { %v856_v23 = vpop.f32.mrf.mxu1  ;;  %v851_v26 = vpop.f32.mrf.mxu0 }
 0x1a6   :  { %v852_v34 = vadd.f32 %v851_v26, %v2189_v35  ;;  %v1673_v35 = vld [vmem:[%s2579_s3 + $0x94] sm:$0xf] }
 0x1a7   :  { %v1553_v3 = vor.u32 %v1673_v35, %v1550_v57  ;;  %v1564_v35 = vld [vmem:[%s2579_s3 + $0xb0] sm:$0xf]  ;;  %v1678_v57 = vld [vmem:[%s2579_s3 + $0xb4] sm:$0xf0] }
 0x1a8   :  { %895 = vmatmul.bf16.gmra.mxu1 %v1549_v22  ;;  %v1134_v22 = vpop.permute.xlu1 %1133 }
 0x1a9   :  { %1641 = vmatmul.msk.bf16.gmra.mxu3 %vm780_vm4, %v1601_v24  ;;  %1634 = vmatmul.msk.bf16.gmra.mxu2 %vm780_vm4, %v1545_v25  ;;  %v1129_v24 = vpop.permute.xlu0 %1128 }
 0x1ac   :  { %v2396_v29 = vpop.f32.mrf.mxu3  ;;  %v955_v30 = vpop.f32.mrf.mxu2 }
 0x1ad   :  { %v858_v31 = vpop.f32.mrf.mxu1  ;;  %v853_v41 = vpop.f32.mrf.mxu0  ;;  %v956_v42 = vadd.f32 %v955_v30, %v852_v34 }
 0x1ae   :  { %v854_v58 = vadd.f32 %v853_v41, %v2192_v36  ;;  %v857_v36 = vadd.f32 %v856_v23, %v2196_v39  ;;  %v1689_v39 = vld [vmem:[%s2579_s3 + $0x114] sm:$0xf]  ;;  %v1614_v23 = vld [vmem:[%s2579_s3 + $0x118] sm:$0xf0] }
 0x1af   :  { %v1050_v0 = vmax.f32 %v956_v42, 0.0 }
 0x1b1   :  { %v1316_v25 = vmul.f32 %v1129_v24, %v1050_v0  ;;  %v1617_v24 = vor.u32 %v1689_v39, %v1614_v23  ;;  %v1572_v39 = vld [vmem:[%s2579_s3 + $0xc0] sm:$0xf]  ;;  %v1680_v23 = vld [vmem:[%s2579_s3 + $0xc4] sm:$0xf0] }
 0x1b4   :  { %v2422_v59 = vpop.f32.mrf.mxu3  ;;  %v957_v62 = vpop.f32.mrf.mxu2 }
 0x1b5   :  { %v958_v9 = vadd.f32 %v957_v62, %v854_v58  ;;  %v861_v10 = vpop.f32.mrf.mxu1  ;;  %v1675_v58 = vld [vmem:[%s2579_s3 + $0xa4] sm:$0xf]  ;;  %v1558_v62 = vld [vmem:[%s2579_s3 + $0xa8] sm:$0xf0] }
 0x1b7   :  { %v1051_v16 = vmax.f32 %v958_v9, 0.0 }
 0x1b8   :  { %900 = vmatmul.bf16.gmra.mxu1 %v1557_v63  ;;  %v859_v63 = vadd.f32 %v858_v31, %v2194_v38 }
 0x1b9   :  { %v1317_v26 = vmul.f32 %v1134_v22, %v1051_v16  ;;  %1642 = vmatmul.msk.bf16.gmra.mxu3 %vm780_vm4, %v1609_v11  ;;  %1635 = vmatmul.msk.bf16.gmra.mxu2 %vm780_vm4, %v1553_v3  ;;  %v1565_v3 = vor.u32 %v1678_v57, %v1564_v35  ;;  %v1149_v35 = vpop.permute.xlu1 %1148 }
 0x1bb   :  { %v1354_v30 = vadd.f32 %v1317_v26, %v1316_v25  ;;  %v1561_v25 = vor.u32 %v1675_v58, %v1558_v62  ;;  %v1677_v58 = vld [vmem:[%s2579_s3 + $0xb4] sm:$0xf]  ;;  %v1566_v62 = vld [vmem:[%s2579_s3 + $0xb8] sm:$0xf0] }
 0x1bc   :  { %v2429_v34 = vpop.f32.mrf.mxu3  ;;  %v960_v41 = vpop.f32.mrf.mxu2 }
 0x1bd   :  { %v961_v42 = vadd.f32 %v960_v41, %v857_v36  ;;  %v863_v43 = vpop.f32.mrf.mxu1  ;;  %v1144_v36 = vpop.permute.xlu0 %1143 }
 0x1bf   :  { %v1052_v54 = vmax.f32 %v961_v42, 0.0  ;;  %v862_v42 = vadd.f32 %v861_v10, %v2216_v49  ;;  %v1691_v49 = vld [vmem:[%s2579_s3 + $0x124] sm:$0xf]  ;;  %v1622_v10 = vld [vmem:[%s2579_s3 + $0x128] sm:$0x30] }
 0x1c1   :  { %v1318_v56 = vmul.f32 %v1139_v55, %v1052_v54 }
 0x1c3   :  { %v1355_v0 = vadd.f32 %v1354_v30, %v1318_v56 }
 0x1c4   :  { %v2450_v9 = vpop.f32.mrf.mxu3  ;;  %v962_v11 = vpop.f32.mrf.mxu2 }
 0x1c5   :  { %v963_v16 = vadd.f32 %v962_v11, %v859_v63  ;;  %v866_v22 = vpop.f32.mrf.mxu1  ;;  %v864_v63 = vadd.f32 %v863_v43, %v2221_v51 }
 0x1c7   :  { %v1053_v26 = vmax.f32 %v963_v16, 0.0  ;;  %v1573_v16 = vor.u32 %v1680_v23, %v1572_v39  ;;  %v1159_v39 = vpop.permute.xlu0 %1158 }
 0x1c8   :  { %905 = vmatmul.bf16.gmra.mxu1 %v1565_v3 }
 0x1c9   :  { %v1319_v41 = vmul.f32 %v1144_v36, %v1053_v26  ;;  %1643 = vmatmul.msk.bf16.gmra.mxu3 %vm780_vm4, %v1617_v24  ;;  %1636 = vmatmul.msk.bf16.gmra.mxu2 %vm780_vm4, %v1561_v25  ;;  %v1625_v26 = vor.u32 %v1691_v49, %v1622_v10  ;;  %v1569_v36 = vor.u32 %v1677_v58, %v1566_v62  ;;  %v1679_v49 = vld [vmem:[%s2579_s3 + $0xc4] sm:$0xf]  ;;  %v1574_v10 = vld [vmem:[%s2579_s3 + $0xc8] sm:$0xf0]  ;;  %s1745_s3 = smov [#allocation3]  }
 0x1ca   :  { %s1413_s10 = sshll.u32 %s1745_s3, 4  ;;  %s1414_s10 = int_to_ptr.vmem [resolvable:$true] %s1413_s10 }
 0x1cb   :  { %v1356_v38 = vadd.f32 %v1355_v0, %v1319_v41 }
 0x1cc   :  { %v2455_v31 = vpop.f32.mrf.mxu3  ;;  %v965_v30 = vpop.f32.mrf.mxu2 }
 0x1cd   :  { %v966_v54 = vadd.f32 %v965_v30, %v862_v42  ;;  %v868_v55 = vpop.f32.mrf.mxu1  ;;  %v1154_v42 = vpop.permute.xlu2 %1153 }
 0x1ce   :  { %v869_v58 = vadd.f32 %v868_v55, %v2223_v53 }
 0x1cf   :  { %v1054_v56 = vmax.f32 %v966_v54, 0.0  ;;  %v867_v54 = vadd.f32 %v866_v22, %v2219_v50 }
 0x1d1   :  { %v1320_v57 = vmul.f32 %v1149_v35, %v1054_v56 }
 0x1d3   :  { %v1357_v0 = vadd.f32 %v1356_v38, %v1320_v57 }
 0x1d4   :  { %v2476_v11 = vpop.f32.mrf.mxu3  ;;  %v967_v3 = vpop.f32.mrf.mxu2 }
 0x1d5   :  { %v968_v24 = vadd.f32 %v967_v3, %v864_v63  ;;  %v871_v25 = vpop.f32.mrf.mxu1  ;;  %v1577_v3 = vor.u32 %v1679_v49, %v1574_v10 }
 0x1d7   :  { %v1055_v41 = vmax.f32 %v968_v24, 0.0  ;;  %v1164_v24 = vpop.permute.xlu1 %1163 }
 0x1d8   :  { %910 = vmatmul.bf16.gmra.mxu1 %v1573_v16 }
 0x1d9   :  { %v1321_v30 = vmul.f32 %v1154_v42, %v1055_v41  ;;  %1644 = vmatmul.msk.bf16.gmra.mxu3 %vm780_vm4, %v1625_v26  ;;  %1637 = vmatmul.msk.bf16.gmra.mxu2 %vm780_vm4, %v1569_v36  ;;  %v872_v36 = vadd.f32 %v871_v25, %v2245_v61 }
 0x1db   :  { %v1358_v51 = vadd.f32 %v1357_v0, %v1321_v30 }
 0x1dc   :  { %v2481_v43 = vpop.f32.mrf.mxu3  ;;  %v970_v38 = vpop.f32.mrf.mxu2 }
 0x1dd   :  { %2590 = vst [vmem:[#allocation12_spill] sm:$0xff] %v2481_v43  ;;  %v971_v56 = vadd.f32 %v970_v38, %v867_v54  ;;  %v873_v35 = vpop.f32.mrf.mxu1 }
 0x1df   :  { %v1056_v57 = vmax.f32 %v971_v56, 0.0  ;;  %v874_v56 = vadd.f32 %v873_v35, %v2243_v60 }
 0x1e1   :  { %v1322_v23 = vmul.f32 %v1159_v39, %v1056_v57 }
 0x1e3   :  { %v1359_v50 = vadd.f32 %v1358_v51, %v1322_v23  ;;  %v1169_v51 = vpop.permute.xlu2 %1168 }
 0x1e4   :  { %v2490_v22 = vpop.f32.mrf.mxu3  ;;  %v972_v62 = vpop.f32.mrf.mxu2 }
 0x1e5   :  { %2591 = vst [vmem:[#allocation13_spill] sm:$0xff] %v2490_v22  ;;  %v973_v63 = vadd.f32 %v972_v62, %v869_v58  ;;  %v876_v0 = vpop.f32.mrf.mxu1  ;;  %v1174_v62 = vpop.permute.xlu0 %1173 }
 0x1e6   :  { %v877_v25 = vadd.f32 %v876_v0, %v2248_v1  ;;  %v917_v0 = vadd.f32 %v2396_v29, %v2340_v48 }
 0x1e7   :  { %v1057_v16 = vmax.f32 %v973_v63, 0.0 }
 0x1e9   :  { %v1323_v26 = vmul.f32 %v1164_v24, %v1057_v16  ;;  %1638 = vmatmul.msk.bf16.gmra.mxu2 %vm780_vm4, %v1577_v3 }
 0x1eb   :  { %v1360_v41 = vadd.f32 %v1359_v50, %v1323_v26 }
 0x1ec   :  { %v2494_v42 = vpop.f32.mrf.mxu3  ;;  %v975_v30 = vpop.f32.mrf.mxu2 }
 0x1ed   :  { %2592 = vst [vmem:[#allocation14_spill] sm:$0xff] %v2494_v42  ;;  %v976_v54 = vadd.f32 %v975_v30, %v872_v36  ;;  %v878_v53 = vpop.f32.mrf.mxu1  ;;  %v1179_v36 = vpop.permute.xlu1 %1178 }
 0x1ee   :  { %v879_v35 = vadd.f32 %v878_v53, %v2252_v4 }
 0x1ef   :  { %v1058_v55 = vmax.f32 %v976_v54, 0.0 }
 0x1f1   :  { %v1324_v38 = vmul.f32 %v1169_v51, %v1058_v55 }
 0x1f3   :  { %v1361_v57 = vadd.f32 %v1360_v41, %v1324_v38 }
 0x1f4   :  { %v2497_v39 = vpop.f32.mrf.mxu3  ;;  %v977_v23 = vpop.f32.mrf.mxu2 }
 0x1f5   :  { %2593 = vst [vmem:[#allocation15_spill] sm:$0xff] %v2497_v39  ;;  %v978_v49 = vadd.f32 %v977_v23, %v874_v56  ;;  %v881_v10 = vpop.f32.mrf.mxu1  ;;  %v1184_v56 = vpop.permute.xlu2 %1183 }
 0x1f6   :  { %v1194_v48 = vpop.permute.xlu1 %1193 }
 0x1f7   :  { %v1059_v58 = vmax.f32 %v978_v49, 0.0 }
 0x1f9   :  { %v1325_v61 = vmul.f32 %v1174_v62, %v1059_v58 }
 0x1fb   :  { %v1362_v50 = vadd.f32 %v1361_v57, %v1325_v61  ;;  %v882_v57 = vadd.f32 %v881_v10, %v2250_v2 }
 0x1fc   :  { %v2500_v63 = vpop.f32.mrf.mxu3  ;;  %v980_v3 = vpop.f32.mrf.mxu2 }
 0x1fd   :  { %2594 = vst [vmem:[#allocation16_spill] sm:$0xff] %v2500_v63  ;;  %v981_v16 = vadd.f32 %v980_v3, %v877_v25  ;;  %v883_v24 = vpop.f32.mrf.mxu1  ;;  %v1189_v25 = vpop.permute.xlu0 %1188 }
 0x1fe   :  { %v884_v3 = vadd.f32 %v883_v24, %v2272_v12 }
 0x1ff   :  { %v1060_v26 = vmax.f32 %v981_v16, 0.0 }
 0x201   :  { %v1326_v60 = vmul.f32 %v1179_v36, %v1060_v26 }
 0x203   :  { %v1363_v41 = vadd.f32 %v1362_v50, %v1326_v60 }
 0x204   :  { %v2503_v30 = vpop.f32.mrf.mxu3  ;;  %v982_v54 = vpop.f32.mrf.mxu2 }
 0x205   :  { %2595 = vst [vmem:[#allocation17_spill] sm:$0xff] %v2503_v30  ;;  %v983_v55 = vadd.f32 %v982_v54, %v879_v35  ;;  %v886_v51 = vpop.f32.mrf.mxu1 }
 0x206   :  { %v887_v2 = vadd.f32 %v886_v51, %v2276_v15 }
 0x207   :  { %v1061_v38 = vmax.f32 %v983_v55, 0.0 }
 0x209   :  { %v1327_v1 = vmul.f32 %v1184_v56, %v1061_v38  ;;  %v1199_v56 = vpop.permute.xlu2 %1198 }
 0x20b   :  { %v1364_v23 = vadd.f32 %v1363_v41, %v1327_v1 }
 0x20c   :  { %v1020_v49 = vpop.f32.mrf.mxu3  ;;  %v985_v58 = vpop.f32.mrf.mxu2 }
 0x20d   :  { %v2508_v62 = vadd.f32 %v1020_v49, %v917_v0  ;;  %v986_v4 = vadd.f32 %v985_v58, %v882_v57  ;;  %v888_v53 = vpop.f32.mrf.mxu1 }
 0x20f   :  { %v1062_v61 = vmax.f32 %v986_v4, 0.0 }
 0x211   :  { %v1328_v50 = vmul.f32 %v1189_v25, %v1062_v61 }
 0x213   :  { %v1365_v16 = vadd.f32 %v1364_v23, %v1328_v50 }
 0x214   :  { %v987_v26 = vpop.f32.mrf.mxu2  ;;  %v2512_v55 = vpop.f32.mrf.mxu3 }
 0x215   :  { %v988_v36 = vadd.f32 %v987_v26, %v884_v3  ;;  %v891_v60 = vpop.f32.mrf.mxu1  ;;  %v1209_v3 = vpop.permute.xlu1 %1208 }
 0x216   :  { %v892_v30 = vadd.f32 %v891_v60, %v2279_v52 }
 0x217   :  { %v1063_v35 = vmax.f32 %v988_v36, 0.0 }
 0x219   :  { %v1329_v29 = vmul.f32 %v1194_v48, %v1063_v35  ;;  %v1214_v48 = vpop.permute.xlu2 %1213 }
 0x21b   :  { %v1366_v10 = vadd.f32 %v1365_v16, %v1329_v29  ;;  %v1204_v16 = vpop.permute.xlu0 %1203 }
 0x21c   :  { %v990_v41 = vpop.f32.mrf.mxu2  ;;  %v2514_v24 = vpop.f32.mrf.mxu3 }
 0x21d   :  { %v991_v54 = vadd.f32 %v990_v41, %v887_v2  ;;  %v893_v1 = vpop.f32.mrf.mxu1  ;;  %v1224_v29 = vpop.permute.xlu1 %1223 }
 0x21e   :  { %v894_v39 = vadd.f32 %v893_v1, %v2292_v20 }
 0x21f   :  { %v1064_v38 = vmax.f32 %v991_v54, 0.0 }
 0x221   :  { %v1330_v0 = vmul.f32 %v1199_v56, %v1064_v38  ;;  %v889_v38 = vadd.f32 %v888_v53, %v2274_v14  ;;  %v1229_v56 = vpop.permute.xlu2 %1228 }
 0x223   :  { %v1367_v57 = vadd.f32 %v1366_v10, %v1330_v0  ;;  %v1219_v2 = vpop.permute.xlu0 %1218 }
 0x224   :  { %v992_v12 = vpop.f32.mrf.mxu2  ;;  %v2516_v58 = vpop.f32.mrf.mxu3 }
 0x225   :  { %v896_v23 = vpop.f32.mrf.mxu1  ;;  %v1239_v0 = vpop.permute.xlu1 %1238  ;;  %v993_v13 = vadd.f32 %v992_v12, %v889_v38 }
 0x227   :  { %v1065_v22 = vmax.f32 %v993_v13, 0.0 }
 0x229   :  { %v1331_v43 = vmul.f32 %v1204_v16, %v1065_v22  ;;  %v1244_v12 = vpop.permute.xlu2 %1243 }
 0x22b   :  { %v1234_v63 = vpop.permute.xlu0 %1233 }
 0x22c   :  { %v995_v49 = vpop.f32.mrf.mxu2  ;;  %v2518_v51 = vpop.f32.mrf.mxu3 }
 0x22d   :  { %v898_v4 = vpop.f32.mrf.mxu1  ;;  %v996_v33 = vadd.f32 %v995_v49, %v892_v30  ;;  %v1254_v20 = vpop.permute.xlu1 %1253 }
 0x22e   :  { %v899_v14 = vadd.f32 %v898_v4, %v2303_v37 }
 0x234   :  { %v997_v61 = vpop.f32.mrf.mxu2  ;;  %v2520_v26 = vpop.f32.mrf.mxu3 }
 0x235   :  { %v901_v25 = vpop.f32.mrf.mxu1  ;;  %2596 = vst [vmem:[#allocation18_spill] sm:$0xff] %v2520_v26  ;;  %v998_v17 = vadd.f32 %v997_v61, %v894_v39  ;;  %v1066_v26 = vmax.f32 %v996_v33, 0.0  ;;  %v1368_v33 = vadd.f32 %v1367_v57, %v1331_v43 }
 0x236   :  { %v902_v52 = vadd.f32 %v901_v25, %v2308_v21 }
 0x237   :  { %v1067_v18 = vmax.f32 %v998_v17, 0.0  ;;  %v1332_v38 = vmul.f32 %v1209_v3, %v1066_v26 }
 0x239   :  { %v1369_v21 = vadd.f32 %v1368_v33, %v1332_v38 }
 0x23c   :  { %v1000_v15 = vpop.f32.mrf.mxu2  ;;  %v2522_v10 = vpop.f32.mrf.mxu3 }
 0x23d   :  { %v903_v36 = vpop.f32.mrf.mxu1  ;;  %2597 = vst [vmem:[#allocation19_spill] sm:$0xff] %v2522_v10  ;;  %v897_v10 = vadd.f32 %v896_v23, %v2290_v19  ;;  %v1249_v19 = vpop.permute.xlu0 %1248  ;;  %v1333_v23 = vmul.f32 %v1214_v48, %v1067_v18 }
 0x23e   :  { %v904_v1 = vadd.f32 %v903_v36, %v2306_v28  ;;  %v1259_v48 = vpop.permute.xlu2 %1258 }
 0x23f   :  { %v1001_v53 = vadd.f32 %v1000_v15, %v897_v10 }
 0x241   :  { %v1068_v30 = vmax.f32 %v1001_v53, 0.0 }
 0x243   :  { %v1334_v4 = vmul.f32 %v1219_v2, %v1068_v30 }
 0x244   :  { %v1002_v50 = vpop.f32.mrf.mxu2  ;;  %v2526_v32 = vpop.f32.mrf.mxu3 }
 0x245   :  { %v906_v41 = vpop.f32.mrf.mxu1  ;;  %2598 = vst [vmem:[#allocation20_spill] sm:$0xff] %v2526_v32  ;;  %v1003_v60 = vadd.f32 %v1002_v50, %v899_v14  ;;  %v1370_v50 = vadd.f32 %v1369_v21, %v1333_v23  ;;  %v2600_v21 = vld [vmem:[#allocation12_spill] sm:$0xff] }
 0x246   :  { %v907_v17 = vadd.f32 %v906_v41, %v2328_v40  ;;  %v1269_v40 = vpop.permute.xlu1 %1268 }
 0x247   :  { %v1069_v49 = vmax.f32 %v1003_v60, 0.0  ;;  %v1371_v43 = vadd.f32 %v1370_v50, %v1334_v4  ;;  %v2603_v50 = vld [vmem:[#allocation13_spill] sm:$0xff] }
 0x249   :  { %v1335_v3 = vmul.f32 %v1224_v29, %v1069_v49 }
 0x24b   :  { %v1372_v10 = vadd.f32 %v1371_v43, %v1335_v3 }
 0x24c   :  { %v1005_v35 = vpop.f32.mrf.mxu2  ;;  %v2533_v13 = vpop.f32.mrf.mxu3 }
 0x24d   :  { %v908_v42 = vpop.f32.mrf.mxu1  ;;  %v1006_v39 = vadd.f32 %v1005_v35, %v902_v52  ;;  %v922_v52 = vadd.f32 %v2429_v34, %v2360_v5 }
 0x24e   :  { %v909_v15 = vadd.f32 %v908_v42, %v2332_v45  ;;  %v1264_v45 = vpop.permute.xlu0 %1263  ;;  %v1284_v5 = vpop.permute.xlu1 %1283 }
 0x24f   :  { %v1070_v61 = vmax.f32 %v1006_v39, 0.0  ;;  %v1076_v39 = vmax.f32 %v2508_v62, 0.0 }
 0x251   :  { %v1336_v18 = vmul.f32 %v1229_v56, %v1070_v61  ;;  %v2601_v61 = vld [vmem:[#allocation18_spill] sm:$0xff] }
 0x253   :  { %v1373_v42 = vadd.f32 %v1372_v10, %v1336_v18 }
 0x254   :  { %v1007_v54 = vpop.f32.mrf.mxu2  ;;  %v2538_v41 = vpop.f32.mrf.mxu3 }
 0x255   :  { %v911_v37 = vpop.f32.mrf.mxu1  ;;  %v1008_v22 = vadd.f32 %v1007_v54, %v904_v1 }
 0x256   :  { %v912_v16 = vadd.f32 %v911_v37, %v2330_v44  ;;  %v919_v44 = vadd.f32 %v2422_v59, %v2338_v47  ;;  %v1026_v47 = vadd.f32 %v2514_v24, %v922_v52  ;;  %v1279_v49 = vpop.permute.xlu0 %1278 }
 0x257   :  { %v1071_v28 = vmax.f32 %v1008_v22, 0.0  ;;  %v2599_v22 = vld [vmem:[#allocation7_spill] sm:$0xff] }
 0x258   :  { %v1023_v38 = vadd.f32 %v2512_v55, %v919_v44  ;;  %v1078_v62 = vmax.f32 %v1026_v47, 0.0  ;;  %v932_v4 = vadd.f32 %v2600_v21, %v2599_v22 }
 0x259   :  { %v1337_v2 = vmul.f32 %v1234_v63, %v1071_v28 }
 0x25a   :  { %v1077_v34 = vmax.f32 %v1023_v38, 0.0  ;;  %v1344_v3 = vmul.f32 %v1269_v40, %v1078_v62  ;;  %v2613_v38 = vld [vmem:[#allocation17_spill] sm:$0xff] }
 0x25c   :  { %v1010_v27 = vpop.f32.mrf.mxu2  ;;  %v1045_v23 = vpop.f32.mrf.mxu3 }
 0x25d   :  { %v1011_v25 = vadd.f32 %v1010_v27, %v907_v17  ;;  %v913_v27 = vpop.f32.mrf.mxu1 }
 0x25e   :  { %v914_v56 = vadd.f32 %v913_v27, %v2336_v46  ;;  %v1274_v46 = vpop.permute.xlu2 %1273  ;;  %v1299_v27 = vpop.permute.xlu1 %1298 }
 0x25f   :  { %v1072_v57 = vmax.f32 %v1011_v25, 0.0  ;;  %v2602_v25 = vld [vmem:[#allocation6_spill] sm:$0xff] }
 0x261   :  { %v1338_v29 = vmul.f32 %v1239_v0, %v1072_v57  ;;  %v924_v0 = vadd.f32 %v2450_v9, %v2366_v7  ;;  %v929_v7 = vadd.f32 %v2476_v11, %v2368_v8  ;;  %v1342_v9 = vmul.f32 %v1259_v48, %v1076_v39  ;;  %v2607_v57 = vld [vmem:[#allocation20_spill] sm:$0xff] }
 0x263   :  { %v1028_v55 = vadd.f32 %v2516_v58, %v924_v0 }
 0x264   :  { %v1012_v32 = vpop.f32.mrf.mxu2 }
 0x265   :  { %v1013_v26 = vadd.f32 %v1012_v32, %v909_v15  ;;  %v1374_v32 = vadd.f32 %v1373_v42, %v1337_v2  ;;  %v1033_v15 = vadd.f32 %v2601_v61, %v929_v7  ;;  %v2608_v2 = vld [vmem:[#allocation10_spill] sm:$0xff] }
 0x266   :  { %v1289_v10 = vpop.permute.xlu2 %1288  ;;  %v1314_v62 = vpop.permute.xlu1 %1313 }
 0x267   :  { %v1073_v54 = vmax.f32 %v1013_v26, 0.0  ;;  %v1375_v63 = vadd.f32 %v1374_v32, %v1338_v29  ;;  %v2605_v26 = vld [vmem:[#allocation8_spill] sm:$0xff]  ;;  %v1081_v18 = vmax.f32 %v1033_v15, 0.0  ;;  %v1294_v32 = vpop.permute.xlu0 %1293 }
 0x269   :  { %v1339_v53 = vmul.f32 %v1244_v12, %v1073_v54  ;;  %v927_v12 = vadd.f32 %v2455_v31, %v2364_v6  ;;  %v1343_v6 = vmul.f32 %v1264_v45, %v1077_v34  ;;  %v1079_v31 = vmax.f32 %v1028_v55, 0.0  ;;  %v2609_v54 = vld [vmem:[#allocation15_spill] sm:$0xff] }
 0x26a   :  { %v939_v45 = vadd.f32 %v2609_v54, %v2608_v2 }
 0x26b   :  { %v1376_v59 = vadd.f32 %v1375_v63, %v1339_v53  ;;  %v1031_v24 = vadd.f32 %v2518_v51, %v927_v12  ;;  %v1345_v43 = vmul.f32 %v1274_v46, %v1079_v31  ;;  %v2611_v53 = vld [vmem:[#allocation16_spill] sm:$0xff] }
 0x26c   :  { %v1015_v36 = vpop.f32.mrf.mxu2  ;;  %v1043_v0 = vadd.f32 %v2538_v41, %v939_v45 }
 0x26d   :  { %v1016_v35 = vadd.f32 %v1015_v36, %v912_v16  ;;  %v1080_v28 = vmax.f32 %v1031_v24, 0.0  ;;  %v2604_v16 = vld [vmem:[#allocation19_spill] sm:$0xff]  ;;  %v2606_v36 = vld [vmem:[#allocation14_spill] sm:$0xff] }
 0x26e   :  { %v1036_v8 = vadd.f32 %v2604_v16, %v932_v4  ;;  %v937_v51 = vadd.f32 %v2606_v36, %v2605_v26  ;;  %v1085_v34 = vmax.f32 %v1043_v0, 0.0 }
 0x26f   :  { %v1074_v14 = vmax.f32 %v1016_v35, 0.0  ;;  %v1346_v42 = vmul.f32 %v1279_v49, %v1080_v28 }
 0x270   :  { %v1082_v29 = vmax.f32 %v1036_v8, 0.0  ;;  %v1041_v40 = vadd.f32 %v2533_v13, %v937_v51 }
 0x271   :  { %v1340_v30 = vmul.f32 %v1249_v19, %v1074_v14  ;;  %v1047_v14 = vpop.f32.mrf.mxu3 }
 0x273   :  { %v1377_v19 = vadd.f32 %v1376_v59, %v1340_v30  ;;  %v1347_v30 = vmul.f32 %v1284_v5, %v1081_v18  ;;  %v1348_v59 = vmul.f32 %v1289_v10, %v1082_v29 }
 0x274   :  { %v1017_v60 = vpop.f32.mrf.mxu2 }
 0x275   :  { %v1018_v1 = vadd.f32 %v1017_v60, %v914_v56  ;;  %v2610_v56 = vld [vmem:[#allocation9_spill] sm:$0xff]  ;;  %v2612_v60 = vld [vmem:[#allocation11_spill] sm:$0xff] }
 0x276   :  { %v942_v52 = vadd.f32 %v2611_v53, %v2610_v56  ;;  %v944_v63 = vadd.f32 %v2613_v38, %v2612_v60 }
 0x277   :  { %v1075_v33 = vmax.f32 %v1018_v1, 0.0 }
 0x278   :  { %v1048_v47 = vadd.f32 %v1047_v14, %v944_v63  ;;  %v1046_v46 = vadd.f32 %v1045_v23, %v942_v52 }
 0x279   :  { %v1341_v37 = vmul.f32 %v1254_v20, %v1075_v33  ;;  %v934_v20 = vadd.f32 %v2603_v50, %v2602_v25  ;;  %v1084_v33 = vmax.f32 %v1041_v40, 0.0 }
 0x27a   :  { %v1086_v49 = vmax.f32 %v1046_v46, 0.0 }
 0x27b   :  { %v1378_v17 = vadd.f32 %v1377_v19, %v1341_v37  ;;  %v1038_v35 = vadd.f32 %v2607_v57, %v934_v20  ;;  %v1087_v19 = vmax.f32 %v1048_v47, 0.0  ;;  %v1350_v37 = vmul.f32 %v1299_v27, %v1084_v33 }
 0x27d   :  { %v1379_v58 = vadd.f32 %v1378_v17, %v1342_v9  ;;  %v1083_v1 = vmax.f32 %v1038_v35, 0.0  ;;  %v1304_v9 = vpop.permute.xlu2 %1303  ;;  %v1309_v17 = vpop.permute.xlu0 %1308  ;;  %v1353_v22 = vmul.f32 %v1314_v62, %v1087_v19 }
 0x27e   :  { %v1351_v24 = vmul.f32 %v1304_v9, %v1085_v34  ;;  %v1352_v41 = vmul.f32 %v1309_v17, %v1086_v49 }
 0x27f   :  { %v1380_v11 = vadd.f32 %v1379_v58, %v1343_v6  ;;  %v1349_v13 = vmul.f32 %v1294_v32, %v1083_v1  ;;  %v1391_v6 = vsel %vm1390_vm5, %v1353_v22, 0.0 }
 0x281   :  { %v1381_v48 = vadd.f32 %v1380_v11, %v1344_v3 }
 0x283   :  { %v1382_v44 = vadd.f32 %v1381_v48, %v1345_v43 }
 0x285   :  { %v1383_v39 = vadd.f32 %v1382_v44, %v1346_v42  ;;  %v1403_v25 = vpop.permute.xlu2 %1402 }
 0x286   :  { %v1405_v20 = vperm.slane %v1403_v25, 0 }
 0x287   :  { %v1384_v12 = vadd.f32 %v1383_v39, %v1347_v30 }
 0x289   :  { %v1385_v55 = vadd.f32 %v1384_v12, %v1348_v59 }
 0x28b   :  { %v1386_v7 = vadd.f32 %v1385_v55, %v1349_v13 }
 0x28d   :  { %v1387_v5 = vadd.f32 %v1386_v7, %v1350_v37 }
 0x28f   :  { %v1388_v21 = vadd.f32 %v1387_v5, %v1351_v24 }
 0x291   :  { %v1389_v4 = vadd.f32 %v1388_v21, %v1352_v41 }
 0x293   :  { %v1392_v23 = vadd.f32 %v1391_v6, %v1389_v4 }
 0x295   :  { %v1393_v31 = vrot.slane %v1392_v23, 4 }
 0x297   :  { %v1394_v61 = vadd.f32 %v1393_v31, %v1392_v23 }
 0x299   :  { %v1395_v15 = vrot.slane %v1394_v61, 2 }
 0x29b   :  { %v1396_v58 = vadd.f32 %v1395_v15, %v1394_v61 }
 0x29d   :  { %v1397_v50 = vrot.slane %v1396_v58, 1 }
 0x29f   :  { %v1398_v3 = vadd.f32 %v1397_v50, %v1396_v58 }
 0x2a1   :  { %v1406_v28 = vadd.f32 %v1405_v20, %v1398_v3 }
 0x2a3   :  { %1407 = vst [vmem:[#allocation3] sm:$0x1] %v1406_v28 }
 0x2a4   :  { %1418 = dma.vmem_to_hbm [thread:$0]  %s1414_s10, 16, %s1416_s2, [#allocation4]  }
 0x2a5   :  { %1741 = dma.done.wait [#allocation4], 16  }
 0x2a6   :  { %1742 = vsyncadd [#allocation4], 4294967280 }
 0x2a7   :  { %1423 = vsyncpa [#allocation4], 1 }

</bundles_post_ra>
